<compile_context>
chip_gen: v6e
topology: v6e:2x2x1
jax: 0.10.0
libtpu: 0.0.40
codegen_flags: <defaults>
</compile_context>

<pallas_src>
import functools

import jax
import jax.numpy as jnp
from jax.experimental import pallas as pl
from jax.experimental.pallas import tpu as pltpu


OBS_PAD = 8      # sublane-aligned padded obs features (also holds the ones col)
HID_PAD = 128    # lane-aligned padded hidden width
ACT_PAD = 128    # lane-aligned padded action width (unmasked output stores)


def _round_up(n, m):
    return ((n + m - 1) // m) * m


def dqn_mlp_kernel(x_ref, w1_ref, w2_ref, o_ref, *, hidden_size):
    """Fused Linear -> ReLU -> Linear with both biases folded into the matmuls.

    x_ref:  (Bt, OBS_PAD)  f32; column `obs_size` carries a constant 1.0
    w1_ref: (OBS_PAD, HID_PAD) f32; row `obs_size` holds b1, rest of pad is 0
    w2_ref: (HID_PAD, ACT_PAD) f32; row `hidden_size` holds b2, rest of pad is 0
    o_ref:  (Bt, ACT_PAD)  f32
    """
    x = x_ref[...]  # already float32 (x.float() handled in the wrapper)

    # Layer 1: x @ W1 (+ b1 via the ones column of x), then ReLU.
    h = jnp.maximum(
        jnp.dot(x, w1_ref[...], preferred_element_type=jnp.float32), 0.0)

    # Padded hidden columns (>= hidden_size) are zero after layer 1; put a 1.0
    # at column `hidden_size` so row `hidden_size` of the W2 slab (= b2) folds
    # the second bias into the second matmul.
    col = jax.lax.broadcasted_iota(jnp.int32, h.shape, 1)
    h = jnp.where(col == hidden_size, jnp.float32(1.0), h)

    # Layer 2: h @ W2 (+ b2 via the ones column).  Lane-dense (…,128) store.
    o_ref[...] = jnp.dot(h, w2_ref[...], preferred_element_type=jnp.float32)


def pack_params(w1, b1, w2, b2):
    """Pack (W1, b1, W2, b2) into two padded, (8,128)-aligned f32 slabs."""
    obs_size, hidden_size = w1.shape
    _, n_actions = w2.shape
    assert obs_size < OBS_PAD, "need a spare row in the W1 slab for b1"
    assert hidden_size < HID_PAD, "need a spare row in the W2 slab for b2"
    assert n_actions <= ACT_PAD

    w1_slab = jnp.zeros((OBS_PAD, HID_PAD), jnp.float32)
    w1_slab = w1_slab.at[:obs_size, :hidden_size].set(w1.astype(jnp.float32))
    w1_slab = w1_slab.at[obs_size, :hidden_size].set(
        b1.astype(jnp.float32).reshape(-1))

    w2_slab = jnp.zeros((HID_PAD, ACT_PAD), jnp.float32)
    w2_slab = w2_slab.at[:hidden_size, :n_actions].set(w2.astype(jnp.float32))
    w2_slab = w2_slab.at[hidden_size, :n_actions].set(
        b2.astype(jnp.float32).reshape(-1))
    return w1_slab, w2_slab


def dqn_net_forward(x, w1, b1, w2, b2, *, batch_block=512):
    """Fused DqnNet forward: returns (batch, n_actions) f32 logits."""
    obs_size, hidden_size = w1.shape
    _, n_actions = w2.shape
    batch = x.shape[0]

    # Pad batch to a sublane multiple; if it exceeds one block, round up to a
    # whole number of batch blocks for the tiled path.
    b_pad = _round_up(max(batch, 8), 8)
    if b_pad > batch_block:
        b_pad = _round_up(b_pad, batch_block)

    # x.float() + pad to (b_pad, OBS_PAD); column `obs_size` = 1.0 folds b1.
    x_pad = jnp.zeros((b_pad, OBS_PAD), jnp.float32)
    x_pad = x_pad.at[:batch, :obs_size].set(x.astype(jnp.float32))
    x_pad = x_pad.at[:batch, obs_size].set(1.0)

    w1_slab, w2_slab = pack_params(w1, b1, w2, b2)

    kernel = functools.partial(dqn_mlp_kernel, hidden_size=hidden_size)
    out_shape = jax.ShapeDtypeStruct((b_pad, ACT_PAD), jnp.float32)
    vmem = pltpu.MemorySpace.VMEM

    if b_pad <= batch_block:
        # Small batch: single invocation, no grid, every operand one full
        # VMEM block (no per-step pipeline bookkeeping).
        out = pl.pallas_call(
            kernel,
            out_shape=out_shape,
            in_specs=[
                pl.BlockSpec(memory_space=vmem),
                pl.BlockSpec(memory_space=vmem),
                pl.BlockSpec(memory_space=vmem),
            ],
            out_specs=pl.BlockSpec(memory_space=vmem),
        )(x_pad, w1_slab, w2_slab)
    else:
        # Large batch (replay batches / vectorized envs): tile the batch dim,
        # mark it parallel so v7x can split it across both TensorCores.
        out = pl.pallas_call(
            kernel,
            out_shape=out_shape,
            grid=(b_pad // batch_block,),
            in_specs=[
                pl.BlockSpec((batch_block, OBS_PAD), lambda i: (i, 0)),
                pl.BlockSpec((OBS_PAD, HID_PAD), lambda i: (0, 0)),
                pl.BlockSpec((HID_PAD, ACT_PAD), lambda i: (0, 0)),
            ],
            out_specs=pl.BlockSpec((batch_block, ACT_PAD), lambda i: (i, 0)),
            compiler_params=pltpu.CompilerParams(
                dimension_semantics=("parallel",)),
        )(x_pad, w1_slab, w2_slab)

    return out[:batch, :n_actions]


def init_params(key, obs_size, hidden_size, n_actions):
    """Deterministic PyTorch-style (Kaiming-uniform-ish) init for the two Linears."""
    k1, k2, k3, k4 = jax.random.split(key, 4)
    bound1 = 1.0 / jnp.sqrt(obs_size)
    bound2 = 1.0 / jnp.sqrt(hidden_size)
    # Stored as (in_features, out_features) == torch weight.T
    w1 = jax.random.uniform(k1, (obs_size, hidden_size), jnp.float32, -bound1, bound1)
    b1 = jax.random.uniform(k2, (1, hidden_size), jnp.float32, -bound1, bound1)
    w2 = jax.random.uniform(k3, (hidden_size, n_actions), jnp.float32, -bound2, bound2)
    b2 = jax.random.uniform(k4, (1, n_actions), jnp.float32, -bound2, bound2)
    return w1, b1, w2, b2


if __name__ == "__main__":
    # CartPole-like sizes: obs_size=4, hidden=32, n_actions=2, batch=8.
    batch, obs_size, hidden_size, n_actions = 8, 4, 32, 2

    key = jax.random.PRNGKey(0)
    kx, kp = jax.random.split(key)
    x = jax.random.normal(kx, (batch, obs_size), dtype=jnp.float32)
    w1, b1, w2, b2 = init_params(kp, obs_size, hidden_size, n_actions)

    out = jax.block_until_ready(dqn_net_forward(x, w1, b1, w2, b2))

    # Pure-JAX reference check (same math as torch's nn.Sequential).
    ref = jnp.maximum(x @ w1 + b1, 0.0) @ w2 + b2
    assert out.shape == (batch, n_actions)
    assert jnp.allclose(out, ref, atol=1e-5, rtol=1e-5), "mismatch vs reference"

    # Also exercise the batched / tiled "parallel" path once.
    big_batch = 1024
    xb = jax.random.normal(kx, (big_batch, obs_size), dtype=jnp.float32)
    out_big = jax.block_until_ready(dqn_net_forward(xb, w1, b1, w2, b2))
    ref_big = jnp.maximum(xb @ w1 + b1, 0.0) @ w2 + b2
    assert out_big.shape == (big_batch, n_actions)
    assert jnp.allclose(out_big, ref_big, atol=1e-5, rtol=1e-5), "batched mismatch"

    print("KERNEL_OK")
</pallas_src>

<mosaic_0001>
module attributes {stable_mosaic.version = 11 : i64} {
  func.func @dqn_mlp_kernel(%arg0: memref<8x8xf32, #tpu.memory_space<vmem>>, %arg1: memref<8x128xf32, #tpu.memory_space<vmem>>, %arg2: memref<128x128xf32, #tpu.memory_space<vmem>>, %arg3: memref<8x128xf32, #tpu.memory_space<vmem>>) attributes {dimension_semantics = [], scalar_prefetch = 0 : i64, scratch_operands = 0 : i64, tpu.core_type = #tpu.core_type<tc>} {
    %c0 = arith.constant 0 : index
    %c0_0 = arith.constant 0 : index
    %0 = vector.load %arg0[%c0, %c0_0] : memref<8x8xf32, #tpu.memory_space<vmem>>, vector<8x8xf32>
    %c0_1 = arith.constant 0 : index
    %c0_2 = arith.constant 0 : index
    %1 = vector.load %arg1[%c0_1, %c0_2] : memref<8x128xf32, #tpu.memory_space<vmem>>, vector<8x128xf32>
    %cst = arith.constant dense<0.000000e+00> : vector<8x128xf32>
    %2 = tpu.matmul %0, %1, %cst {dimension_numbers = #tpu.dot_dimension_numbers<[1], [0], [0], [1], [0, 0, 1, 1], [], []>} : vector<8x8xf32>, vector<8x128xf32>, vector<8x128xf32> -> vector<8x128xf32>
    %cst_3 = arith.constant 0.000000e+00 : f32
    %3 = vector.broadcast %cst_3 : f32 to vector<8x128xf32>
    %4 = arith.maximumf %2, %3 : vector<8x128xf32>
    %5 = tpu.iota {dimensions = array<i32: 1>} : vector<8x128xi32>
    %c32_i32 = arith.constant 32 : i32
    %6 = vector.broadcast %c32_i32 : i32 to vector<8x128xi32>
    %7 = arith.cmpi eq, %5, %6 : vector<8x128xi32>
    %cst_4 = arith.constant 1.000000e+00 : f32
    %8 = vector.broadcast %cst_4 : f32 to vector<8x128xf32>
    %9 = arith.select %7, %8, %4 : vector<8x128xi1>, vector<8x128xf32>
    %c0_5 = arith.constant 0 : index
    %c0_6 = arith.constant 0 : index
    %10 = vector.load %arg2[%c0_5, %c0_6] : memref<128x128xf32, #tpu.memory_space<vmem>>, vector<128x128xf32>
    %cst_7 = arith.constant dense<0.000000e+00> : vector<8x128xf32>
    %11 = tpu.matmul %9, %10, %cst_7 {dimension_numbers = #tpu.dot_dimension_numbers<[1], [0], [0], [1], [0, 0, 1, 1], [], []>} : vector<8x128xf32>, vector<128x128xf32>, vector<8x128xf32> -> vector<8x128xf32>
    %c0_8 = arith.constant 0 : index
    %c0_9 = arith.constant 0 : index
    %12 = vector.load %arg3[%c0_8, %c0_9] : memref<8x128xf32, #tpu.memory_space<vmem>>, vector<8x128xf32>
    tpu.vector_store %arg3[%c0_8, %c0_9], %11 {strides = array<i32>} : memref<8x128xf32, #tpu.memory_space<vmem>>, vector<8x128xf32>,
    return
  }
}

</mosaic_0001>

<bundles_post_ra>
// kernel: tpu_custom_call.1
= control target key start
LH: loop header
LB: loop body
LE: loop exit
PB: predicated region body
PF: predicated region fallthrough
CT: control target
= control target key end

     0   :  { %8 = vsyncpa [#allocation3], 0  ;;  %s430_s0 = inlined_call_operand.hbm [shape: f32[8,8], index: 0, kind: input, shape index: {}]   ;;  %s431_s1 = inlined_call_operand.hbm [shape: f32[8,128], index: 1, kind: input, shape index: {}]   ;;  %s432_s2 = inlined_call_operand.hbm [shape: f32[128,128], index: 2, kind: input, shape index: {}]   ;;  %s433_s3 = inlined_call_operand.hbm [shape: f32[8,128], index: 3, kind: output, shape index: {}]  }
   0x1   :  { %9 = vsyncpa [#allocation6], 0 }
   0x2   :  { %10 = vsyncpa [#allocation4], 0  ;;  %s390_s12 = smov [#allocation5]   ;;  %s391_s14 = smov [#allocation2]  }
   0x3   :  { %s27_s13 = sshll.u32 %s390_s12, 4  ;;  %s17_s15 = sshll.u32 %s391_s14, 4  ;;  %s28_s13 = int_to_ptr.vmem [resolvable:$true] %s27_s13  ;;  %s18_s15 = int_to_ptr.vmem [resolvable:$true] %s17_s15 }
   0x4   :  { %s312_s16 = scalar_lea.vmem %s28_s13, 128  ;;  %p317_p1 = scmp.lt.s32.totalorder %s28_s13, %s28_s13 }
   0x5   :  { %p313_p0 = scmp.ne.s32.totalorder %s28_s13, %s312_s16  ;;  %p318_p2 = scmp.lt.s32.totalorder %s312_s16, %s312_s16 }
   0x7   :  { %p319_p3 = por %p318_p2, %p317_p1 }
   0x9   :  { %p320_p4 = pnand %p319_p3, %p313_p0 }
   0xb   :  { %323 = shalt.err (!%p320_p4)
}
   0xc   :  { %30 = dma.hbm_to_vmem [thread:$0]  %s431_s1, 128, %s28_s13, [#allocation6]  }
   0xd   :  { %s332_s19 = scalar_lea.vmem %s18_s15, 128  ;;  %p337_p6 = scmp.lt.s32.totalorder %s18_s15, %s18_s15 }
   0xe   :  { %p333_p5 = scmp.ne.s32.totalorder %s18_s15, %s332_s19  ;;  %p338_p7 = scmp.lt.s32.totalorder %s332_s19, %s332_s19 }
  0x10   :  { %p339_p8 = por %p338_p7, %p337_p6 }
  0x12   :  { %p340_p9 = pnand %p339_p8, %p333_p5 }
  0x14   :  { %343 = shalt.err (!%p340_p9)
}
  0x15   :  { %20 = dma.hbm_to_vmem [thread:$0]  %s430_s0, 128, %s18_s15, [#allocation3]  }
  0x16   :  { %s392_s22 = smov [#allocation7]  }
  0x17   :  { %s36_s23 = sshll.u32 %s392_s22, 4  ;;  %s37_s23 = int_to_ptr.vmem [resolvable:$true] %s36_s23 }
  0x18   :  { %s352_s24 = scalar_lea.vmem %s37_s23, 2048  ;;  %p357_p11 = scmp.lt.s32.totalorder %s37_s23, %s37_s23 }
  0x19   :  { %p353_p10 = scmp.ne.s32.totalorder %s37_s23, %s352_s24  ;;  %p358_p12 = scmp.lt.s32.totalorder %s352_s24, %s352_s24 }
  0x1b   :  { %p359_p13 = por %p358_p12, %p357_p11 }
  0x1d   :  { %p360_p0 = pnand %p359_p13, %p353_p10 }
  0x1f   :  { %363 = shalt.err (!%p360_p0)
}
  0x20   :  { %s393_s1 = smov 128   ;;  %s394_s25 = smov 8  }
  0x21   :  { %42 = dma.hbm_to_vmem [thread:$0]  %s432_s2, 2048, %s37_s23, [#allocation6], %s393_s1, %s393_s1, %s394_s25  }
  0x22   :  { %384 = dma.done.wait [#allocation3], 128  }
  0x23   :  { %385 = vsyncadd [#allocation3], 4294967168 }
  0x24   :  { %386 = dma.done.wait [#allocation6], 2176  }
  0x25   :  { %387 = vsyncadd [#allocation6], 4294965120  ;;  %v395_v0 = vmov 0.0   ;;  %vm396_vm0 = vmmov 0   ;;  %vm54_vm1 = vcmask 64512   ;;  %v53_v1 = vld [vmem:[#allocation5] sm:$0xff]  ;;  %v129_v19 = vlaneseq }
  0x26   :  { %256 = vmatprep.subr.mxu0 %v395_v0  ;;  %258 = vmatprep.mubr.msk.f32.mxu0 %vm396_vm0, %v395_v0  ;;  %v52_v2 = vld [vmem:[#allocation2] sm:$0xff]  ;;  %v148_v3 = vld [vmem:[#allocation7 + $0x78] sm:$0xff]  ;;  %v146_v5 = vld [vmem:[#allocation7 + $0x68] sm:$0xff]  ;;  %s397_s0 = smov [#allocation8]  }
  0x27   :  { %261 = vmatprep.subr.mxu1 %v395_v0  ;;  %293 = vmatprep.mubr.msk.f32.mxu1 %vm396_vm0, %v395_v0  ;;  %v147_v4 = vld [vmem:[#allocation7 + $0x70] sm:$0xff]  ;;  %v145_v6 = vld [vmem:[#allocation7 + $0x60] sm:$0xff]  ;;  %v144_v7 = vld [vmem:[#allocation7 + $0x58] sm:$0xff]  ;;  %v130_v20 = vand.u32 127, %v129_v19  ;;  %s226_s2 = sshll.u32 %s397_s0, 4  ;;  %s227_s2 = int_to_ptr.vmem [resolvable:$true] %s226_s2 }
  0x28   :  { %257 = vmatpush3.msra.mxu0 %v53_v1  ;;  %262 = vmatpush3.msra.mxu1 %v148_v3  ;;  %v143_v8 = vld [vmem:[#allocation7 + $0x50] sm:$0xff]  ;;  %v142_v9 = vld [vmem:[#allocation7 + $0x48] sm:$0xff]  ;;  %v141_v10 = vld [vmem:[#allocation7 + $0x40] sm:$0xff]  ;;  %s364_s28 = scalar_lea.vmem %s227_s2, 128  ;;  %p369_p2 = scmp.lt.s32.totalorder %s227_s2, %s227_s2 }
  0x29   :  { %259 = vmatmul.mubr.msk.f32.vlgmr.msra.gmra.mxu0 %vm54_vm1, %v52_v2  ;;  %263 = vmatprep.subr.mxu1 %v395_v0  ;;  %v140_v11 = vld [vmem:[#allocation7 + $0x38] sm:$0xff]  ;;  %v139_v12 = vld [vmem:[#allocation7 + $0x30] sm:$0xff]  ;;  %v138_v13 = vld [vmem:[#allocation7 + $0x28] sm:$0xff]  ;;  %vm131_vm2 = vcmp.eq.s32.totalorder %v130_v20, 32  ;;  %p365_p1 = scmp.ne.s32.totalorder %s227_s2, %s364_s28  ;;  %p370_p3 = scmp.lt.s32.totalorder %s364_s28, %s364_s28 }
  0x2a   :  { %264 = vmatpush3.msra.mxu1 %v147_v4  ;;  %v137_v14 = vld [vmem:[#allocation7 + $0x20] sm:$0xff]  ;;  %v136_v15 = vld [vmem:[#allocation7 + $0x18] sm:$0xff]  ;;  %v135_v16 = vld [vmem:[#allocation7 + $0x10] sm:$0xff] }
  0x2b   :  { %265 = vmatprep.subr.mxu1 %v395_v0  ;;  %v134_v17 = vld [vmem:[#allocation7 + $0x8] sm:$0xff]  ;;  %v133_v18 = vld [vmem:[#allocation7] sm:$0xff]  ;;  %p371_p4 = por %p370_p3, %p369_p2 }
  0x2c   :  { %266 = vmatpush3.msra.mxu1 %v146_v5 }
  0x2d   :  { %267 = vmatprep.subr.mxu1 %v395_v0  ;;  %p372_p5 = pnand %p371_p4, %p365_p1 }
  0x2e   :  { %268 = vmatpush3.msra.mxu1 %v145_v6 }
  0x2f   :  { %269 = vmatprep.subr.mxu1 %v395_v0 }
  0x30   :  { %270 = vmatpush3.msra.mxu1 %v144_v7 }
  0x31   :  { %271 = vmatprep.subr.mxu1 %v395_v0 }
  0x32   :  { %272 = vmatpush3.msra.mxu1 %v143_v8 }
  0x33   :  { %273 = vmatprep.subr.mxu1 %v395_v0 }
  0x34   :  { %274 = vmatpush3.msra.mxu1 %v142_v9 }
  0x35   :  { %275 = vmatprep.subr.mxu1 %v395_v0 }
  0x36   :  { %276 = vmatpush3.msra.mxu1 %v141_v10 }
  0x37   :  { %277 = vmatprep.subr.mxu1 %v395_v0 }
  0x38   :  { %278 = vmatpush3.msra.mxu1 %v140_v11 }
  0x39   :  { %279 = vmatprep.subr.mxu1 %v395_v0 }
  0x3a   :  { %280 = vmatpush3.msra.mxu1 %v139_v12 }
  0x3b   :  { %281 = vmatprep.subr.mxu1 %v395_v0 }
  0x3c   :  { %282 = vmatpush3.msra.mxu1 %v138_v13 }
  0x3d   :  { %283 = vmatprep.subr.mxu1 %v395_v0 }
  0x3e   :  { %284 = vmatpush3.msra.mxu1 %v137_v14 }
  0x3f   :  { %285 = vmatprep.subr.mxu1 %v395_v0 }
  0x40   :  { %286 = vmatpush3.msra.mxu1 %v136_v15 }
  0x41   :  { %287 = vmatprep.subr.mxu1 %v395_v0 }
  0x42   :  { %288 = vmatpush3.msra.mxu1 %v135_v16 }
  0x43   :  { %289 = vmatprep.subr.mxu1 %v395_v0 }
  0x44   :  { %290 = vmatpush3.msra.mxu1 %v134_v17 }
  0x45   :  { %291 = vmatprep.subr.mxu1 %v395_v0 }
  0x46   :  { %292 = vmatpush3.msra.mxu1 %v133_v18 }
  0xe9   :  { %v124_v21 = vpop.f32.mrf.mxu0 }
  0xea   :  { %v128_v22 = vmax.f32 %v124_v21, 0.0 }
  0xeb   :  { %v260_v23 = vpop.f32.mrf.mxu0 }
  0xec   :  { %v132_v24 = vsel %vm131_vm2, 1.0, %v128_v22 }
  0xed   :  { %294 = vmatmul.mubr.f32.vlgmr.msra.gmra.mxu1 %v132_v24 }
 0x1ad   :  { %v215_v25 = vpop.f32.mrf.mxu1 }
 0x1ae   :  { %219 = vst [vmem:[#allocation8] sm:$0xff] %v215_v25 }
 0x1af   :  { %v295_v26 = vpop.f32.mrf.mxu1 }
 0x1b0   :  { %375 = shalt.err (!%p372_p5)
}
 0x1b1   :  { %229 = dma.vmem_to_hbm [thread:$0]  %s227_s2, 128, %s433_s3, [#allocation4]  }
 0x1b2   :  { %388 = dma.done.wait [#allocation4], 128  }
 0x1b3   :  { %389 = vsyncadd [#allocation4], 4294967168 }
 0x1b4   :  { %233 = vsyncpa [#allocation3], 1 }
 0x1b5   :  { %234 = vsyncpa [#allocation6], 1 }
 0x1b6   :  { %235 = vsyncpa [#allocation4], 1 }

</bundles_post_ra>
